<compile_context>
chip_gen: v6e
topology: v6e:2x2x1
jax: 0.10.0
libtpu: 0.0.40
codegen_flags: <defaults>
</compile_context>

<pallas_src>
import jax
import jax.numpy as jnp
from jax.experimental import pallas as pl
from jax.experimental.pallas import tpu as pltpu

IN_DIM = 100     # model1.hidden in_features
HID_DIM = 20     # model1.hidden out_features / model1.out in_features
OUT_DIM = 100    # model1.out out_features

IN_PAD = 128     # IN_DIM padded to lane width
OUT_PAD = 128    # OUT_DIM padded to lane width
MAX_TB = 512     # max batch-tile rows


def mlp_kernel(x_ref, w_ref, b_ref, o_ref):
    # One lane-dense MXU matmul + bias add per batch tile.
    y = jnp.dot(x_ref[...], w_ref[...], preferred_element_type=jnp.float32)
    o_ref[...] = (y + b_ref[...]).astype(o_ref.dtype)


def fold_and_pad_params(w1, b1, w2, b2):
    """Fold Linear(100,20)->Linear(20,100) into one affine map, pad to 128.

    w1: (IN_DIM, HID_DIM), b1: (1, HID_DIM), w2: (HID_DIM, OUT_DIM),
    b2: (1, OUT_DIM)  -- weights stored (in, out) so the kernel does plain
    row-major matmuls.  Valid only because model1 has NO activation between
    the two Linears.
    """
    w1f = w1.astype(jnp.float32)
    w2f = w2.astype(jnp.float32)
    w12 = w1f @ w2f                                               # (IN_DIM, OUT_DIM)
    b12 = b1.astype(jnp.float32) @ w2f + b2.astype(jnp.float32)   # (1, OUT_DIM)
    # Zero-pad (zeros, not garbage, so padded lanes contribute nothing).
    w12p = jnp.zeros((IN_PAD, OUT_PAD), jnp.float32).at[:IN_DIM, :OUT_DIM].set(w12)
    b12p = jnp.zeros((1, OUT_PAD), jnp.float32).at[:, :OUT_DIM].set(b12)
    return w12p, b12p


def _forward_impl(x, w12p, b12p):
    """x: (B, IN_DIM) -> (B, OUT_DIM) using the folded, padded params."""
    B = x.shape[0]
    # Batch tile: multiple of 8 sublanes, capped at MAX_TB rows.
    b_pad8 = -(-B // 8) * 8
    tb_eff = min(MAX_TB, b_pad8)
    B_pad = -(-B // tb_eff) * tb_eff

    # Zero-pad batch rows and feature lanes (100 -> 128) in one shot.
    xp = jnp.zeros((B_pad, IN_PAD), x.dtype).at[:B, :IN_DIM].set(x)

    grid = (B_pad // tb_eff,)
    yp = pl.pallas_call(
        mlp_kernel,
        out_shape=jax.ShapeDtypeStruct((B_pad, OUT_PAD), x.dtype),
        grid=grid,
        in_specs=[
            # X tile streams along batch.
            pl.BlockSpec((tb_eff, IN_PAD), lambda i: (i, 0)),
            # Folded weight / bias: constant index_map -> stay VMEM-resident.
            pl.BlockSpec((IN_PAD, OUT_PAD), lambda i: (0, 0)),
            pl.BlockSpec((1, OUT_PAD), lambda i: (0, 0)),
        ],
        out_specs=pl.BlockSpec((tb_eff, OUT_PAD), lambda i: (i, 0)),
        compiler_params=pltpu.CompilerParams(
            dimension_semantics=("parallel",)),
    )(xp, w12p, b12p)

    # Slice away batch + lane padding.
    return yp[:B, :OUT_DIM]


# Jit so pad / pallas_call / slice fuse into one XLA program.
model1_forward = jax.jit(_forward_impl)


def init_params(key):
    # Deterministic init mimicking PyTorch nn.Linear default:
    # U(-1/sqrt(fan_in), 1/sqrt(fan_in)) for both weight and bias.
    k1, k2, k3, k4 = jax.random.split(key, 4)
    bound1 = 1.0 / jnp.sqrt(IN_DIM)
    bound2 = 1.0 / jnp.sqrt(HID_DIM)
    # Stored already-transposed ((in, out)) for row-major matmuls.
    w1 = jax.random.uniform(k1, (IN_DIM, HID_DIM), jnp.float32, -bound1, bound1)
    b1 = jax.random.uniform(k2, (1, HID_DIM), jnp.float32, -bound1, bound1)
    w2 = jax.random.uniform(k3, (HID_DIM, OUT_DIM), jnp.float32, -bound2, bound2)
    b2 = jax.random.uniform(k4, (1, OUT_DIM), jnp.float32, -bound2, bound2)
    return w1, b1, w2, b2


if __name__ == "__main__":
    key = jax.random.PRNGKey(0)
    kx, kp = jax.random.split(key)

    B = 8
    x = jax.random.normal(kx, (B, IN_DIM), dtype=jnp.float32)
    w1, b1, w2, b2 = init_params(kp)

    # Fold + pad once (outside the per-step path).
    w12p, b12p = fold_and_pad_params(w1, b1, w2, b2)

    y = model1_forward(x, w12p, b12p)
    jax.block_until_ready(y)

    # Reference check against the unfolded two-Linear computation in plain JAX.
    y_ref = (x @ w1 + b1) @ w2 + b2
    assert y.shape == (B, OUT_DIM)
    assert jnp.allclose(y, y_ref, atol=1e-4, rtol=1e-4)

    print("KERNEL_OK")
</pallas_src>

<mosaic_0001>
module attributes {stable_mosaic.version = 11 : i64} {
  func.func @mlp_kernel(%arg0: i32, %arg1: memref<8x128xf32, #tpu.memory_space<vmem>>, %arg2: memref<128x128xf32, #tpu.memory_space<vmem>>, %arg3: memref<1x128xf32, #tpu.memory_space<vmem>>, %arg4: memref<8x128xf32, #tpu.memory_space<vmem>>) attributes {dimension_semantics = [#tpu.dimension_semantics<parallel>], iteration_bounds = array<i64: 1>, scalar_prefetch = 0 : i64, scratch_operands = 0 : i64, tpu.core_type = #tpu.core_type<tc>, window_params = [{transform_indices = @transform_0, window_bounds = array<i64: 8, 128>}, {pipeline_mode = #tpu.pipeline_mode<synchronous>, transform_indices = @transform_1, window_bounds = array<i64: 128, 128>}, {pipeline_mode = #tpu.pipeline_mode<synchronous>, transform_indices = @transform_2, window_bounds = array<i64: 1, 128>}, {transform_indices = @transform_3, window_bounds = array<i64: 8, 128>}]} {
    %c0 = arith.constant 0 : index
    %c0_0 = arith.constant 0 : index
    %0 = vector.load %arg1[%c0, %c0_0] : memref<8x128xf32, #tpu.memory_space<vmem>>, vector<8x128xf32>
    %c0_1 = arith.constant 0 : index
    %c0_2 = arith.constant 0 : index
    %1 = vector.load %arg2[%c0_1, %c0_2] : memref<128x128xf32, #tpu.memory_space<vmem>>, vector<128x128xf32>
    %cst = arith.constant dense<0.000000e+00> : vector<8x128xf32>
    %2 = tpu.matmul %0, %1, %cst {dimension_numbers = #tpu.dot_dimension_numbers<[1], [0], [0], [1], [0, 0, 1, 1], [], []>} : vector<8x128xf32>, vector<128x128xf32>, vector<8x128xf32> -> vector<8x128xf32>
    %c0_3 = arith.constant 0 : index
    %c0_4 = arith.constant 0 : index
    %3 = vector.load %arg3[%c0_3, %c0_4] : memref<1x128xf32, #tpu.memory_space<vmem>>, vector<1x128xf32>
    %4 = vector.broadcast %3 : vector<1x128xf32> to vector<8x128xf32>
    %5 = arith.addf %2, %4 : vector<8x128xf32>
    %c0_5 = arith.constant 0 : index
    %c0_6 = arith.constant 0 : index
    %6 = vector.load %arg4[%c0_5, %c0_6] : memref<8x128xf32, #tpu.memory_space<vmem>>, vector<8x128xf32>
    tpu.vector_store %arg4[%c0_5, %c0_6], %5 {strides = array<i32>} : memref<8x128xf32, #tpu.memory_space<vmem>>, vector<8x128xf32>,
    return
  }
  func.func @transform_0(%arg0: i32) -> (i32, i32) {
    %c0_i32 = arith.constant 0 : i32
    %c0_i32_0 = arith.constant 0 : i32
    return %arg0, %c0_i32 : i32, i32
  }
  func.func @transform_1(%arg0: i32) -> (i32, i32) {
    %c0_i32 = arith.constant 0 : i32
    %c0_i32_0 = arith.constant 0 : i32
    %c0_i32_1 = arith.constant 0 : i32
    return %c0_i32, %c0_i32_0 : i32, i32
  }
  func.func @transform_2(%arg0: i32) -> (i32, i32) {
    %c0_i32 = arith.constant 0 : i32
    %c0_i32_0 = arith.constant 0 : i32
    %c0_i32_1 = arith.constant 0 : i32
    return %c0_i32, %c0_i32_0 : i32, i32
  }
  func.func @transform_3(%arg0: i32) -> (i32, i32) {
    %c0_i32 = arith.constant 0 : i32
    %c0_i32_0 = arith.constant 0 : i32
    return %arg0, %c0_i32 : i32, i32
  }
}

</mosaic_0001>

<bundles_post_ra>
// kernel: _forward_impl.1
= control target key start
LH: loop header
LB: loop body
LE: loop exit
PB: predicated region body
PF: predicated region fallthrough
CT: control target
= control target key end

     0   :  { %8 = vsyncpa [#allocation3], 0  ;;  %s280_s0 = inlined_call_operand.vmem [shape: f32[8,128], index: 0, kind: input, shape index: {}]   ;;  %s281_s1 = inlined_call_operand.hbm [shape: f32[128,128], index: 1, kind: input, shape index: {}]   ;;  %s282_s2 = inlined_call_operand.vmem [shape: f32[1,128], index: 2, kind: input, shape index: {}]   ;;  %s283_s3 = inlined_call_operand.hbm [shape: f32[8,128], index: 3, kind: output, shape index: {}]  }
   0x1   :  { %9 = vsyncpa [#allocation4], 0  ;;  %s242_s12 = smov [#allocation2]  }
   0x2   :  { %s17_s13 = sshll.u32 %s242_s12, 4  ;;  %s18_s13 = int_to_ptr.vmem [resolvable:$true] %s17_s13 }
   0x3   :  { %s206_s14 = scalar_lea.vmem %s18_s13, 2048  ;;  %p211_p1 = scmp.lt.s32.totalorder %s18_s13, %s18_s13 }
   0x4   :  { %p207_p0 = scmp.ne.s32.totalorder %s18_s13, %s206_s14  ;;  %p212_p2 = scmp.lt.s32.totalorder %s206_s14, %s206_s14 }
   0x6   :  { %p213_p3 = por %p212_p2, %p211_p1 }
   0x8   :  { %p214_p4 = pnand %p213_p3, %p207_p0 }
   0xa   :  { %217 = shalt.err (!%p214_p4)
}
   0xb   :  { %s243_s15 = smov 128   ;;  %s244_s16 = smov 8  }
   0xc   :  { %23 = dma.hbm_to_vmem [thread:$0]  %s281_s1, 2048, %s18_s13, [#allocation3], %s243_s15, %s243_s15, %s244_s16  }
   0xd   :  { %238 = dma.done.wait [#allocation3], 2048  }
   0xe   :  { %239 = vsyncadd [#allocation3], 4294965248  ;;  %v245_v0 = vmov 0.0   ;;  %vm246_vm0 = vmmov 0   ;;  %v45_v1 = vld [vmem:[#allocation2 + $0x78] sm:$0xff]  ;;  %v44_v2 = vld [vmem:[#allocation2 + $0x70] sm:$0xff] }
   0xf   :  { %157 = vmatprep.subr.mxu0 %v245_v0  ;;  %189 = vmatprep.mubr.msk.f32.mxu0 %vm246_vm0, %v245_v0  ;;  %v43_v3 = vld [vmem:[#allocation2 + $0x68] sm:$0xff]  ;;  %v42_v4 = vld [vmem:[#allocation2 + $0x60] sm:$0xff]  ;;  %v41_v5 = vld [vmem:[#allocation2 + $0x58] sm:$0xff]  ;;  %s247_s22 = smov [#allocation5]  }
  0x10   :  { %158 = vmatpush3.msra.mxu0 %v45_v1  ;;  %v40_v6 = vld [vmem:[#allocation2 + $0x50] sm:$0xff]  ;;  %v39_v7 = vld [vmem:[#allocation2 + $0x48] sm:$0xff]  ;;  %v38_v8 = vld [vmem:[#allocation2 + $0x40] sm:$0xff]  ;;  %s130_s23 = sshll.u32 %s247_s22, 4  ;;  %s131_s23 = int_to_ptr.vmem [resolvable:$true] %s130_s23 }
  0x11   :  { %159 = vmatprep.subr.mxu0 %v245_v0  ;;  %v37_v9 = vld [vmem:[#allocation2 + $0x38] sm:$0xff]  ;;  %v36_v10 = vld [vmem:[#allocation2 + $0x30] sm:$0xff]  ;;  %v35_v11 = vld [vmem:[#allocation2 + $0x28] sm:$0xff]  ;;  %s218_s24 = scalar_lea.vmem %s131_s23, 128  ;;  %p223_p6 = scmp.lt.s32.totalorder %s131_s23, %s131_s23 }
  0x12   :  { %160 = vmatpush3.msra.mxu0 %v44_v2  ;;  %v34_v12 = vld [vmem:[#allocation2 + $0x20] sm:$0xff]  ;;  %v33_v13 = vld [vmem:[#allocation2 + $0x18] sm:$0xff]  ;;  %v32_v14 = vld [vmem:[#allocation2 + $0x10] sm:$0xff]  ;;  %p219_p5 = scmp.ne.s32.totalorder %s131_s23, %s218_s24  ;;  %p224_p7 = scmp.lt.s32.totalorder %s218_s24, %s218_s24 }
  0x13   :  { %161 = vmatprep.subr.mxu0 %v245_v0  ;;  %v31_v15 = vld [vmem:[#allocation2 + $0x8] sm:$0xff]  ;;  %v30_v16 = vld [vmem:[#allocation2] sm:$0xff] }
  0x14   :  { %162 = vmatpush3.msra.mxu0 %v43_v3  ;;  %v29_v17 = vld [vmem:[%s280_s0] sm:$0xff]  ;;  %p225_p8 = por %p224_p7, %p223_p6 }
  0x15   :  { %163 = vmatprep.subr.mxu0 %v245_v0  ;;  %v139_v18 = vld [vmem:[%s282_s2] ss:$0 sm:$0xff] }
  0x16   :  { %164 = vmatpush3.msra.mxu0 %v42_v4  ;;  %p226_p9 = pnand %p225_p8, %p219_p5 }
  0x17   :  { %165 = vmatprep.subr.mxu0 %v245_v0 }
  0x18   :  { %166 = vmatpush3.msra.mxu0 %v41_v5 }
  0x19   :  { %167 = vmatprep.subr.mxu0 %v245_v0 }
  0x1a   :  { %168 = vmatpush3.msra.mxu0 %v40_v6 }
  0x1b   :  { %169 = vmatprep.subr.mxu0 %v245_v0 }
  0x1c   :  { %170 = vmatpush3.msra.mxu0 %v39_v7 }
  0x1d   :  { %171 = vmatprep.subr.mxu0 %v245_v0 }
  0x1e   :  { %172 = vmatpush3.msra.mxu0 %v38_v8 }
  0x1f   :  { %173 = vmatprep.subr.mxu0 %v245_v0 }
  0x20   :  { %174 = vmatpush3.msra.mxu0 %v37_v9 }
  0x21   :  { %175 = vmatprep.subr.mxu0 %v245_v0 }
  0x22   :  { %176 = vmatpush3.msra.mxu0 %v36_v10 }
  0x23   :  { %177 = vmatprep.subr.mxu0 %v245_v0 }
  0x24   :  { %178 = vmatpush3.msra.mxu0 %v35_v11 }
  0x25   :  { %179 = vmatprep.subr.mxu0 %v245_v0 }
  0x26   :  { %180 = vmatpush3.msra.mxu0 %v34_v12 }
  0x27   :  { %181 = vmatprep.subr.mxu0 %v245_v0 }
  0x28   :  { %182 = vmatpush3.msra.mxu0 %v33_v13 }
  0x29   :  { %183 = vmatprep.subr.mxu0 %v245_v0 }
  0x2a   :  { %184 = vmatpush3.msra.mxu0 %v32_v14 }
  0x2b   :  { %185 = vmatprep.subr.mxu0 %v245_v0 }
  0x2c   :  { %186 = vmatpush3.msra.mxu0 %v31_v15 }
  0x2d   :  { %187 = vmatprep.subr.mxu0 %v245_v0 }
  0x2e   :  { %188 = vmatpush3.msra.mxu0 %v30_v16 }
  0x2f   :  { %190 = vmatmul.mubr.f32.vlgmr.msra.gmra.mxu0 %v29_v17 }
  0xef   :  { %v119_v19 = vpop.f32.mrf.mxu0 }
  0xf0   :  { %v120_v20 = vadd.f32 %v139_v18, %v119_v19 }
  0xf1   :  { %v191_v21 = vpop.f32.mrf.mxu0 }
  0xf2   :  { %123 = vst [vmem:[#allocation5] sm:$0xff] %v120_v20 }
  0xf3   :  { %229 = shalt.err (!%p226_p9)
}
  0xf4   :  { %133 = dma.vmem_to_hbm [thread:$0]  %s131_s23, 128, %s283_s3, [#allocation4]  }
  0xf5   :  { %240 = dma.done.wait [#allocation4], 128  }
  0xf6   :  { %241 = vsyncadd [#allocation4], 4294967168 }
  0xf7   :  { %137 = vsyncpa [#allocation3], 1 }
  0xf8   :  { %138 = vsyncpa [#allocation4], 1 }

</bundles_post_ra>
